<compile_context>
chip_gen: v7x
topology: tpu7x:2x2x1
jax: 0.10.0
libtpu: 0.0.40
codegen_flags: <defaults>
</compile_context>

<pallas_src>
import functools

import jax
import jax.numpy as jnp
from jax import lax
from jax.experimental import pallas as pl
from jax.experimental.pallas import tpu as pltpu

LANES = 128
SUBLANES = 8


def _round_up(x, m):
    return (x + m - 1) // m * m


def _cdiv(a, b):
    return (a + b - 1) // b


def _tpu_config():
    """(num_cores, target block bytes per input) for the local TPU generation."""
    try:
        kind = jax.devices()[0].device_kind.lower()
    except Exception:
        kind = ""
    is_v7 = ("v7" in kind) or ("tpu7" in kind)
    is_v6 = "v6" in kind
    if is_v7:
        # 2 TensorCores/chip; 32 MiB default scoped VMEM (64 MiB physical).
        return 2, 4 * 1024 * 1024
    if is_v6:
        # 1 TC/chip; 32 MiB default scoped VMEM.
        return 1, 4 * 1024 * 1024
    # v5e & unknown: conservative (v5e's default scoped VMEM is 16 MiB).
    return 1, 2 * 1024 * 1024


def _sse_kernel(x_ref, y_ref, acc_ref, *, rows, block_rows, acc_rows,
                blocks_per_core, needs_mask):
    # acc_ref is this core's (acc_rows, C) partial-sum block; its index_map
    # depends only on the outer ("parallel") axis, so it stays resident in
    # VMEM across the whole inner ("arbitrary") reduction axis.
    @pl.when(pl.program_id(1) == 0)
    def _():
        acc_ref[...] = jnp.zeros_like(acc_ref)

    d = x_ref[...].astype(jnp.float32) - y_ref[...].astype(jnp.float32)
    dd = d * d
    groups = block_rows // acc_rows

    def _accumulate(vals):
        # Fold groups of `acc_rows` rows onto the resident accumulator:
        # acc_rows//8 independent vreg accumulation chains (pure VALU adds),
        # no per-step cross-lane reduce, no sub-vreg masked stores on the
        # hot path.
        acc_ref[...] += vals.reshape(groups, acc_rows,
                                     vals.shape[-1]).sum(axis=0)

    if not needs_mask:
        _accumulate(dd)
    else:
        # Logical (unclamped) block index of this grid step.
        b = pl.program_id(0) * blocks_per_core + pl.program_id(1)
        # Only the block overhanging `rows` (and any redundant clamped block
        # on the last core) needs the mask; all other steps take the cheap
        # mask-free path.
        is_edge = (b + 1) * block_rows > rows

        @pl.when(jnp.logical_not(is_edge))
        def _():
            _accumulate(dd)

        @pl.when(is_edge)
        def _():
            row_idx = lax.broadcasted_iota(jnp.int32, dd.shape, 0)
            _accumulate(jnp.where(b * block_rows + row_idx < rows, dd, 0.0))


def center_loss(outputs, targets, *, block_rows=None, num_cores=None):
    """sum((outputs - targets)**2) / outputs.shape[0], computed in Pallas."""
    assert outputs.shape == targets.shape
    batch = outputs.shape[0] if outputs.ndim >= 1 else 1

    # Consume the native layout: collapse leading dims, keep the last dim in
    # lanes.  Layout-preserving (no relayout / no pad copy) when
    # shape[-2] % 8 == 0; the lane padding of a narrow last dim is already
    # paid by the array's HBM layout, so a dense repack would only add copies.
    if outputs.ndim >= 2:
        lanes = outputs.shape[-1]
        rows = outputs.size // lanes
    else:
        lanes = max(outputs.size, 1)
        rows = 1
    x2d = outputs.reshape(rows, lanes)
    y2d = targets.reshape(rows, lanes)

    auto_cores, block_bytes = _tpu_config()
    if num_cores is None:
        num_cores = auto_cores

    if block_rows is None:
        # VMEM footprint of one f32 row (lane dim padded to 128 in VMEM).
        row_bytes = _round_up(lanes, LANES) * 4
        block_rows = max(SUBLANES, (block_bytes // row_bytes) // 64 * 64)
        # Note: for an extremely large last dim (>~128K f32) even an 8-row
        # block exceeds the VMEM budget; such shapes would also need lane
        # tiling (not needed for typical feature-map inputs).
    if block_rows >= rows:
        block_rows = rows                       # single block along rows
    else:
        block_rows = max(SUBLANES, block_rows // SUBLANES * SUBLANES)

    total_blocks = _cdiv(rows, block_rows)
    if total_blocks < 2:
        num_cores = 1                            # nothing to shard
    blocks_per_core = _cdiv(total_blocks, num_cores)
    # Mask needed iff some logical block overhangs the array or is a redundant
    # (clamped) block on the last core.
    needs_mask = (num_cores * blocks_per_core * block_rows) != rows
    last_block = total_blocks - 1

    # Accumulator height: as many parallel 8-row vreg chains as divide the
    # block (64 -> 8 chains).  When tiled, block_rows is a multiple of 8, so
    # acc_rows is too; the fallback (acc_rows == block_rows) only happens for
    # a single full-extent block with num_cores == 1, which is still a legal
    # output block shape.
    acc_rows = block_rows
    for cand in (64, 32, 16, 8):
        if block_rows % cand == 0:
            acc_rows = cand
            break

    def in_map(c, i):
        b = c * blocks_per_core + i
        # Clamp so the DMA never targets a fully out-of-bounds block; the
        # in-kernel mask (computed from the *logical* b) zeroes any redundant
        # data that the clamped DMA brings in.
        return (jnp.minimum(b, last_block), 0)

    kernel = functools.partial(
        _sse_kernel, rows=rows, block_rows=block_rows, acc_rows=acc_rows,
        blocks_per_core=blocks_per_core, needs_mask=needs_mask)

    partials = pl.pallas_call(
        kernel,
        out_shape=jax.ShapeDtypeStruct((num_cores * acc_rows, lanes),
                                       jnp.float32),
        grid_spec=pltpu.PrefetchScalarGridSpec(
            num_scalar_prefetch=0,
            grid=(num_cores, blocks_per_core),
            in_specs=[
                pl.BlockSpec((block_rows, lanes), in_map),
                pl.BlockSpec((block_rows, lanes), in_map),
            ],
            out_specs=pl.BlockSpec((acc_rows, lanes), lambda c, i: (c, 0)),
        ),
        compiler_params=pltpu.CompilerParams(
            dimension_semantics=("parallel", "arbitrary")),
    )(x2d, y2d)

    # Single tiny final reduce outside the kernel.
    sse = jnp.sum(partials)
    return (sse / jnp.float32(batch)).astype(jnp.float32)


if __name__ == "__main__":
    key = jax.random.PRNGKey(0)
    k1, k2, k3, k4 = jax.random.split(key, 4)

    # Primary check: small NCHW feature-map style input (single-block path,
    # automatic tile / core selection).
    outputs = jax.random.normal(k1, (2, 4, 16, 16), dtype=jnp.float32)
    targets = jax.random.normal(k2, (2, 4, 16, 16), dtype=jnp.float32)
    loss = center_loss(outputs, targets)
    jax.block_until_ready(loss)
    ref = jnp.sum((outputs - targets) ** 2) / outputs.shape[0]
    assert jnp.allclose(loss, ref, rtol=1e-5, atol=1e-5), (loss, ref)

    # Secondary check: force tiny blocks + a 2-wide leading grid axis so the
    # multi-block, pl.when-gated mask, and clamped-redundant-block paths are
    # exercised at small size (rows = 3*4*15 = 180 is not a multiple of the
    # forced 8-row block, and the 23 blocks split unevenly across 2 "cores").
    outputs2 = jax.random.normal(k3, (3, 4, 15, 16), dtype=jnp.float32)
    targets2 = jax.random.normal(k4, (3, 4, 15, 16), dtype=jnp.float32)
    loss2 = center_loss(outputs2, targets2, block_rows=8, num_cores=2)
    jax.block_until_ready(loss2)
    ref2 = jnp.sum((outputs2 - targets2) ** 2) / outputs2.shape[0]
    assert jnp.allclose(loss2, ref2, rtol=1e-5, atol=1e-5), (loss2, ref2)

    print("KERNEL_OK")
</pallas_src>

<mosaic_0001>
module attributes {stable_mosaic.version = 11 : i64} {
  func.func @_sse_kernel(%arg0: i32, %arg1: i32, %arg2: memref<128x16xf32, #tpu.memory_space<vmem>>, %arg3: memref<128x16xf32, #tpu.memory_space<vmem>>, %arg4: memref<64x16xf32, #tpu.memory_space<vmem>>) attributes {dimension_semantics = [#tpu.dimension_semantics<parallel>, #tpu.dimension_semantics<arbitrary>], iteration_bounds = array<i64: 1, 1>, scalar_prefetch = 0 : i64, scratch_operands = 0 : i64, tpu.core_type = #tpu.core_type<tc>, window_params = [{transform_indices = @transform_0, window_bounds = array<i64: 128, 16>}, {transform_indices = @transform_1, window_bounds = array<i64: 128, 16>}, {transform_indices = @transform_2, window_bounds = array<i64: 64, 16>}]} {
    %c0_i32 = arith.constant 0 : i32
    %0 = arith.cmpi eq, %arg1, %c0_i32 : i32
    %1 = arith.extui %0 : i1 to i32
    %c0_i32_0 = arith.constant 0 : i32
    %2 = arith.cmpi ne, %1, %c0_i32_0 : i32
    scf.if %2 {
      %cst_8 = arith.constant 0.000000e+00 : f32
      %12 = vector.broadcast %cst_8 : f32 to vector<64x16xf32>
      %c0_9 = arith.constant 0 : index
      %c0_10 = arith.constant 0 : index
      %13 = vector.load %arg4[%c0_9, %c0_10] : memref<64x16xf32, #tpu.memory_space<vmem>>, vector<64x16xf32>
      tpu.vector_store %arg4[%c0_9, %c0_10], %12 {strides = array<i32>} : memref<64x16xf32, #tpu.memory_space<vmem>>, vector<64x16xf32>,
    } else {
    }
    %c0 = arith.constant 0 : index
    %c0_1 = arith.constant 0 : index
    %3 = vector.load %arg2[%c0, %c0_1] : memref<128x16xf32, #tpu.memory_space<vmem>>, vector<128x16xf32>
    %c0_2 = arith.constant 0 : index
    %c0_3 = arith.constant 0 : index
    %4 = vector.load %arg3[%c0_2, %c0_3] : memref<128x16xf32, #tpu.memory_space<vmem>>, vector<128x16xf32>
    %5 = arith.subf %3, %4 : vector<128x16xf32>
    %6 = arith.mulf %5, %5 : vector<128x16xf32>
    %c0_4 = arith.constant 0 : index
    %c0_5 = arith.constant 0 : index
    %7 = vector.load %arg4[%c0_4, %c0_5] : memref<64x16xf32, #tpu.memory_space<vmem>>, vector<64x16xf32>
    %8 = vector.shape_cast %6 : vector<128x16xf32> to vector<2x64x16xf32>
    %cst = arith.constant dense<0.000000e+00> : vector<64x16xf32>
    %9 = vector.multi_reduction <add>, %8, %cst [0] : vector<2x64x16xf32> to vector<64x16xf32>
    %10 = arith.addf %7, %9 : vector<64x16xf32>
    %c0_6 = arith.constant 0 : index
    %c0_7 = arith.constant 0 : index
    %11 = vector.load %arg4[%c0_6, %c0_7] : memref<64x16xf32, #tpu.memory_space<vmem>>, vector<64x16xf32>
    tpu.vector_store %arg4[%c0_6, %c0_7], %10 {strides = array<i32>} : memref<64x16xf32, #tpu.memory_space<vmem>>, vector<64x16xf32>,
    return
  }
  func.func @transform_0(%arg0: i32, %arg1: i32) -> (i32, i32) {
    %c1_i32 = arith.constant 1 : i32
    %0 = arith.muli %arg0, %c1_i32 : i32
    %1 = arith.addi %0, %arg1 : i32
    %c0_i32 = arith.constant 0 : i32
    %2 = arith.minsi %1, %c0_i32 : i32
    %c0_i32_0 = arith.constant 0 : i32
    %c0_i32_1 = arith.constant 0 : i32
    return %2, %c0_i32_0 : i32, i32
  }
  func.func @transform_1(%arg0: i32, %arg1: i32) -> (i32, i32) {
    %c1_i32 = arith.constant 1 : i32
    %0 = arith.muli %arg0, %c1_i32 : i32
    %1 = arith.addi %0, %arg1 : i32
    %c0_i32 = arith.constant 0 : i32
    %2 = arith.minsi %1, %c0_i32 : i32
    %c0_i32_0 = arith.constant 0 : i32
    %c0_i32_1 = arith.constant 0 : i32
    return %2, %c0_i32_0 : i32, i32
  }
  func.func @transform_2(%arg0: i32, %arg1: i32) -> (i32, i32) {
    %c0_i32 = arith.constant 0 : i32
    %c0_i32_0 = arith.constant 0 : i32
    return %arg0, %c0_i32 : i32, i32
  }
}

</mosaic_0001>

<bundles_post_ra>
// kernel: tpu_custom_call.1
= control target key start
LH: loop header
LB: loop body
LE: loop exit
PB: predicated region body
PF: predicated region fallthrough
CT: control target
= control target key end

     0   :  { %vm79_vm0 = vcmask 130048   ;;  %v218_v0 = vmov 0.0   ;;  %s434_s2 = inlined_call_operand.vmem [shape: f32[64,16], index: 2, kind: output, shape index: {}]   ;;  %s435_s0 = inlined_call_operand.vmem [shape: f32[128,16], index: 0, kind: input, shape index: {}]   ;;  %s436_s1 = inlined_call_operand.vmem [shape: f32[128,16], index: 1, kind: input, shape index: {}]  }
   0x1   :  { %80 = vst.msk [vmem:[%s434_s2] sm:$0xff] %vm79_vm0, %v218_v0  ;;  %81 = vst.msk [vmem:[%s434_s2 + $0x8] sm:$0xff] %vm79_vm0, %v218_v0  ;;  %v88_v1 = vld [vmem:[%s435_s0] sm:$0xff]  ;;  %v89_v6 = vld [vmem:[%s435_s0 + $0x8] sm:$0xff] }
   0x2   :  { %82 = vst.msk [vmem:[%s434_s2 + $0x10] sm:$0xff] %vm79_vm0, %v218_v0  ;;  %83 = vst.msk [vmem:[%s434_s2 + $0x18] sm:$0xff] %vm79_vm0, %v218_v0  ;;  %v96_v2 = vld [vmem:[%s435_s0 + $0x40] sm:$0xff]  ;;  %v97_v7 = vld [vmem:[%s435_s0 + $0x48] sm:$0xff] }
   0x3   :  { %84 = vst.msk [vmem:[%s434_s2 + $0x20] sm:$0xff] %vm79_vm0, %v218_v0  ;;  %85 = vst.msk [vmem:[%s434_s2 + $0x28] sm:$0xff] %vm79_vm0, %v218_v0  ;;  %v104_v3 = vld [vmem:[%s436_s1] sm:$0xff]  ;;  %v105_v9 = vld [vmem:[%s436_s1 + $0x8] sm:$0xff] }
   0x4   :  { %86 = vst.msk [vmem:[%s434_s2 + $0x30] sm:$0xff] %vm79_vm0, %v218_v0  ;;  %87 = vst.msk [vmem:[%s434_s2 + $0x38] sm:$0xff] %vm79_vm0, %v218_v0  ;;  %v112_v4 = vld [vmem:[%s436_s1 + $0x40] sm:$0xff]  ;;  %v120_v5 = vsub.f32 %v88_v1, %v104_v3  ;;  %v113_v10 = vld [vmem:[%s436_s1 + $0x48] sm:$0xff]  ;;  %v121_v13 = vsub.f32 %v89_v6, %v105_v9 }
   0x5   :  { %v128_v8 = vsub.f32 %v96_v2, %v112_v4  ;;  %v90_v11 = vld [vmem:[%s435_s0 + $0x10] sm:$0xff]  ;;  %v129_v14 = vsub.f32 %v97_v7, %v113_v10  ;;  %v91_v21 = vld [vmem:[%s435_s0 + $0x18] sm:$0xff]  ;;  %v92_v29 = vld [vmem:[%s435_s0 + $0x20] sm:$0xff] }
   0x6   :  { %v136_v12 = vmul.f32 %v120_v5, %v120_v5  ;;  %v98_v15 = vld [vmem:[%s435_s0 + $0x50] sm:$0xff]  ;;  %v99_v22 = vld [vmem:[%s435_s0 + $0x58] sm:$0xff]  ;;  %v137_v25 = vmul.f32 %v121_v13, %v121_v13  ;;  %v100_v34 = vld [vmem:[%s435_s0 + $0x60] sm:$0xff] }
   0x7   :  { %v106_v16 = vld [vmem:[%s436_s1 + $0x10] sm:$0xff]  ;;  %v144_v18 = vmul.f32 %v128_v8, %v128_v8  ;;  %v107_v23 = vld [vmem:[%s436_s1 + $0x18] sm:$0xff]  ;;  %v145_v26 = vmul.f32 %v129_v14, %v129_v14  ;;  %v108_v35 = vld [vmem:[%s436_s1 + $0x20] sm:$0xff] }
   0x8   :  { %v114_v17 = vld [vmem:[%s436_s1 + $0x50] sm:$0xff]  ;;  %v122_v19 = vsub.f32 %v90_v11, %v106_v16  ;;  %v161_v24 = vsel %vm79_vm0, %v136_v12, 0.0  ;;  %v115_v27 = vld [vmem:[%s436_s1 + $0x58] sm:$0xff]  ;;  %v123_v28 = vsub.f32 %v91_v21, %v107_v23  ;;  %v116_v36 = vld [vmem:[%s436_s1 + $0x60] sm:$0xff]  ;;  %v164_v40 = vsel %vm79_vm0, %v137_v25, 0.0 }
   0x9   :  { %v130_v20 = vsub.f32 %v98_v15, %v114_v17  ;;  %v162_v30 = vsel %vm79_vm0, %v144_v18, 0.0  ;;  %v131_v33 = vsub.f32 %v99_v22, %v115_v27  ;;  %v152_v37 = vld [vmem:[%s434_s2] sm:$0xff]  ;;  %v153_v39 = vld [vmem:[%s434_s2 + $0x8] sm:$0xff]  ;;  %v165_v41 = vsel %vm79_vm0, %v145_v26, 0.0  ;;  %v154_v45 = vld [vmem:[%s434_s2 + $0x10] sm:$0xff] }
   0xa   :  { %v138_v31 = vmul.f32 %v122_v19, %v122_v19  ;;  %v163_v38 = vadd.f32 %v162_v30, %v161_v24  ;;  %v139_v42 = vmul.f32 %v123_v28, %v123_v28  ;;  %v93_v43 = vld [vmem:[%s435_s0 + $0x28] sm:$0xff]  ;;  %v166_v44 = vadd.f32 %v165_v41, %v164_v40  ;;  %v155_v52 = vld [vmem:[%s434_s2 + $0x18] sm:$0xff]  ;;  %v94_v61 = vld [vmem:[%s435_s0 + $0x30] sm:$0xff] }
   0xb   :  { %v146_v32 = vmul.f32 %v130_v20, %v130_v20  ;;  %v147_v48 = vmul.f32 %v131_v33, %v131_v33  ;;  %v101_v49 = vld [vmem:[%s435_s0 + $0x68] sm:$0xff]  ;;  %v124_v54 = vsub.f32 %v92_v29, %v108_v35  ;;  %v132_v59 = vsub.f32 %v100_v34, %v116_v36  ;;  %v102_v62 = vld [vmem:[%s435_s0 + $0x70] sm:$0xff]  ;;  %v95_v5 = vld [vmem:[%s435_s0 + $0x38] sm:$0xff] }
   0xc   :  { %v167_v46 = vsel %vm79_vm0, %v138_v31, 0.0  ;;  %v185_v50 = vadd.f32 %v163_v38, %v152_v37  ;;  %v170_v53 = vsel %vm79_vm0, %v139_v42, 0.0  ;;  %v109_v55 = vld [vmem:[%s436_s1 + $0x28] sm:$0xff]  ;;  %v186_v57 = vadd.f32 %v166_v44, %v153_v39  ;;  %v110_v63 = vld [vmem:[%s436_s1 + $0x30] sm:$0xff]  ;;  %v103_v10 = vld [vmem:[%s435_s0 + $0x78] sm:$0xff] }
   0xd   :  { %v168_v47 = vsel %vm79_vm0, %v146_v32, 0.0  ;;  %v117_v56 = vld [vmem:[%s436_s1 + $0x68] sm:$0xff]  ;;  %v171_v58 = vsel %vm79_vm0, %v147_v48, 0.0  ;;  %v125_v60 = vsub.f32 %v93_v43, %v109_v55  ;;  %v140_v2 = vmul.f32 %v124_v54, %v124_v54  ;;  %v118_v4 = vld [vmem:[%s436_s1 + $0x70] sm:$0xff]  ;;  %v111_v11 = vld [vmem:[%s436_s1 + $0x38] sm:$0xff] }
   0xe   :  { %v169_v51 = vadd.f32 %v168_v47, %v167_v46  ;;  %193 = vst.msk [vmem:[%s434_s2] sm:$0xff] %vm79_vm0, %v185_v50  ;;  %v172_v1 = vadd.f32 %v171_v58, %v170_v53  ;;  %v133_v3 = vsub.f32 %v101_v49, %v117_v56  ;;  %194 = vst.msk [vmem:[%s434_s2 + $0x8] sm:$0xff] %vm79_vm0, %v186_v57  ;;  %v119_v12 = vld [vmem:[%s436_s1 + $0x78] sm:$0xff]  ;;  %v156_v17 = vld [vmem:[%s434_s2 + $0x20] sm:$0xff] }
   0xf   :  { %v148_v6 = vmul.f32 %v132_v59, %v132_v59  ;;  %v141_v7 = vmul.f32 %v125_v60, %v125_v60  ;;  %v126_v8 = vsub.f32 %v94_v61, %v110_v63  ;;  %v134_v9 = vsub.f32 %v102_v62, %v118_v4  ;;  %v157_v23 = vld [vmem:[%s434_s2 + $0x28] sm:$0xff]  ;;  %v158_v28 = vld [vmem:[%s434_s2 + $0x30] sm:$0xff]  ;;  %v159_v37 = vld [vmem:[%s434_s2 + $0x38] sm:$0xff] }
  0x10   :  { %v187_v0 = vadd.f32 %v169_v51, %v154_v45  ;;  %v188_v13 = vadd.f32 %v172_v1, %v155_v52  ;;  %v173_v14 = vsel %vm79_vm0, %v140_v2, 0.0  ;;  %v149_v15 = vmul.f32 %v133_v3, %v133_v3 }
  0x11   :  { %v127_v16 = vsub.f32 %v95_v5, %v111_v11  ;;  %v174_v18 = vsel %vm79_vm0, %v148_v6, 0.0  ;;  %v176_v19 = vsel %vm79_vm0, %v141_v7, 0.0  ;;  %v142_v20 = vmul.f32 %v126_v8, %v126_v8 }
  0x12   :  { %195 = vst.msk [vmem:[%s434_s2 + $0x10] sm:$0xff] %vm79_vm0, %v187_v0  ;;  %v150_v21 = vmul.f32 %v134_v9, %v134_v9  ;;  %196 = vst.msk [vmem:[%s434_s2 + $0x18] sm:$0xff] %vm79_vm0, %v188_v13  ;;  %v175_v22 = vadd.f32 %v174_v18, %v173_v14  ;;  %v177_v24 = vsel %vm79_vm0, %v149_v15, 0.0  ;;  %v135_v25 = vsub.f32 %v103_v10, %v119_v12 }
  0x13   :  { %v143_v26 = vmul.f32 %v127_v16, %v127_v16  ;;  %v178_v27 = vadd.f32 %v177_v24, %v176_v19  ;;  %v179_v29 = vsel %vm79_vm0, %v142_v20, 0.0 }
  0x14   :  { %v180_v30 = vsel %vm79_vm0, %v150_v21, 0.0  ;;  %v189_v31 = vadd.f32 %v175_v22, %v156_v17  ;;  %v151_v33 = vmul.f32 %v135_v25, %v135_v25 }
  0x15   :  { %v181_v32 = vadd.f32 %v180_v30, %v179_v29  ;;  %v182_v34 = vsel %vm79_vm0, %v143_v26, 0.0  ;;  %v190_v35 = vadd.f32 %v178_v27, %v157_v23 }
  0x16   :  { %197 = vst.msk [vmem:[%s434_s2 + $0x20] sm:$0xff] %vm79_vm0, %v189_v31  ;;  %v183_v38 = vsel %vm79_vm0, %v151_v33, 0.0 }
  0x17   :  { %v191_v36 = vadd.f32 %v181_v32, %v158_v28  ;;  %198 = vst.msk [vmem:[%s434_s2 + $0x28] sm:$0xff] %vm79_vm0, %v190_v35  ;;  %v184_v39 = vadd.f32 %v183_v38, %v182_v34 }
  0x19   :  { %199 = vst.msk [vmem:[%s434_s2 + $0x30] sm:$0xff] %vm79_vm0, %v191_v36  ;;  %v192_v40 = vadd.f32 %v184_v39, %v159_v37 }
  0x1b   :  { %200 = vst.msk [vmem:[%s434_s2 + $0x38] sm:$0xff] %vm79_vm0, %v192_v40 }

</bundles_post_ra>
